<compile_context>
chip_gen: v7x
topology: tpu7x:2x2x1
jax: 0.10.0
libtpu: 0.0.40
codegen_flags: <defaults>
</compile_context>

<pallas_src>
import functools
import math

import jax
import jax.numpy as jnp
from jax import lax
from jax.experimental import pallas as pl
from jax.experimental.pallas import tpu as pltpu


NEG_INF = -1e30  # finite "minus infinity" for masked_fill (avoids NaN rows)


# ---------------------------------------------------------------------------
# Kernel body (shared by masked / causal / unmasked entry points)
# ---------------------------------------------------------------------------
def _flash_body(q_ref, k_ref, v_ref, mask_ref, o_ref, m_scr, l_scr, acc_scr, *,
                scale, G, tq, tk, causal, mask_per_head):
    qi = pl.program_id(1)
    ki = pl.program_id(2)

    @pl.when(ki == 0)
    def _init():
        m_scr[...] = jnp.full(m_scr.shape, NEG_INF, m_scr.dtype)
        l_scr[...] = jnp.zeros(l_scr.shape, l_scr.dtype)
        acc_scr[...] = jnp.zeros(acc_scr.shape, acc_scr.dtype)

    def _update():
        if causal:
            # In-kernel causal mask: no (tq, tk) mask DMA per grid step.
            row = qi * tq + lax.broadcasted_iota(jnp.int32, (tq, tk), 0)
            col = ki * tk + lax.broadcasted_iota(jnp.int32, (tq, tk), 1)
            keep = col <= row

        for g in range(G):  # static unroll over folded heads
            # Scale q (tq*D mults, VPU filler under MXU slack) instead of the
            # (tq, tk) score matrix; operands stay in their native dtype.
            q = q_ref[0, g] * jnp.asarray(scale, dtype=q_ref.dtype)  # (tq, D)
            k = k_ref[0, g]                                          # (tk, D)
            v = v_ref[0, g]                                          # (tk, D)

            # 'qd,kd->qk': contract the shared last dim -> no k transpose.
            s = lax.dot_general(q, k, (((1,), (1,)), ((), ())),
                                preferred_element_type=jnp.float32)  # (tq, tk)

            if causal:
                s = jnp.where(keep, s, NEG_INF)
            elif mask_ref is not None:
                m = mask_ref[0, 0, g] if mask_per_head else mask_ref[0, 0]
                s = jnp.where(m == 0, NEG_INF, s)

            # Online (flash) softmax update, f32 accumulation.
            m_prev = m_scr[g]                                         # (tq, 1)
            m_new = jnp.maximum(m_prev, jnp.max(s, axis=-1, keepdims=True))
            alpha = jnp.exp(m_prev - m_new)                           # (tq, 1)
            p = jnp.exp(s - m_new)                                    # (tq, tk)

            l_scr[g] = alpha * l_scr[g] + jnp.sum(p, axis=-1, keepdims=True)
            acc_scr[g] = alpha * acc_scr[g] + jnp.dot(
                p.astype(v.dtype), v, preferred_element_type=jnp.float32)
            m_scr[g] = m_new

    if causal:
        # Skip fully-masked KV tiles entirely (their K/V DMAs are also elided
        # by the clamped index_map in the wrapper).
        @pl.when(ki * tk <= qi * tq + tq - 1)
        def _():
            _update()
    else:
        _update()

    @pl.when(ki == pl.num_programs(2) - 1)
    def _finalize():
        heads = []
        for g in range(G):
            inv_l = pl.reciprocal(l_scr[g], approx=True)  # EUP slot (free-ish)
            heads.append(acc_scr[g] * inv_l)
        # Single lane-dense (tq, G*D) store -> unmasked vst on the writeback.
        o_ref[0] = jnp.concatenate(heads, axis=-1).astype(o_ref.dtype)


def _kernel_nomask(q_ref, k_ref, v_ref, o_ref, m_scr, l_scr, acc_scr, **cfg):
    _flash_body(q_ref, k_ref, v_ref, None, o_ref, m_scr, l_scr, acc_scr, **cfg)


def _kernel_mask(q_ref, k_ref, v_ref, mask_ref, o_ref, m_scr, l_scr, acc_scr,
                 **cfg):
    _flash_body(q_ref, k_ref, v_ref, mask_ref, o_ref, m_scr, l_scr, acc_scr,
                **cfg)


# ---------------------------------------------------------------------------
# Wrapper helpers
# ---------------------------------------------------------------------------
def _choose_tile(s, cap, align):
    """Largest tile <= cap that divides s and is a multiple of `align`;
    falls back to the full extent (always legal: block dim == array dim)."""
    if s <= cap:
        return s
    t = (cap // align) * align
    while t >= align:
        if s % t == 0:
            return t
        t -= align
    return s


def _pick_head_group(H, D):
    """Fold G heads per block so the output last dim is >= 128 lanes."""
    if D >= 128 or H == 1:
        return 1
    want = -(-128 // D)  # ceil(128 / D)
    best = 1
    for g in range(1, H + 1):
        if H % g == 0 and g * D <= 512:
            best = g
            if g >= want:
                break
    return best


# ---------------------------------------------------------------------------
# Public entry point
# ---------------------------------------------------------------------------
def scaled_dot_product_attention(q, k, v, mask=None, *, is_causal=False,
                                 block_q=512, block_k=512,
                                 operand_dtype=None):
    """q, k, v: [B, H, S, D]; mask: optional [Bm, Hm, S, S] (Bm in {1,B},
    Hm in {1,H}); 0 entries are masked out.  is_causal=True builds the causal
    mask in-kernel (do not also pass `mask`).  operand_dtype (e.g. bf16)
    casts q/k/v for MXU-friendly operands; accumulation stays f32."""
    if is_causal and mask is not None:
        raise ValueError("pass either an explicit mask or is_causal, not both")

    B, H, S, D = q.shape
    out_dtype = q.dtype
    scale = 1.0 / math.sqrt(D)

    if operand_dtype is not None:
        q = q.astype(operand_dtype)
        k = k.astype(operand_dtype)
        v = v.astype(operand_dtype)

    G = _pick_head_group(H, D)        # heads folded per block
    HG = H // G
    BHG = B * HG

    has_mask = mask is not None
    tq = _choose_tile(S, block_q, 8)
    # With an explicit mask block, its last dim (tk) must be a multiple of 128
    # (or == S).
    tk = _choose_tile(S, block_k, 128 if has_mask else 8)
    nq, nk = S // tq, S // tk

    # Pure reshapes (no copy): split H into (H//G, G) contiguous groups.
    qf = q.reshape(BHG, G, S, D)
    kf = k.reshape(BHG, G, S, D)
    vf = v.reshape(BHG, G, S, D)

    q_spec = pl.BlockSpec((1, G, tq, D), lambda bh, qi, ki: (bh, 0, qi, 0))

    if is_causal:
        # Clamp the KV block index to the last tile intersecting the causal
        # region of this q tile: clamped steps re-use the previous block, so
        # their HBM DMAs are elided (compute is gated off in the kernel).
        def kv_map(bh, qi, ki):
            last = (qi * tq + tq - 1) // tk
            return (bh, 0, jnp.minimum(ki, last), 0)
    else:
        def kv_map(bh, qi, ki):
            return (bh, 0, ki, 0)

    kv_spec = pl.BlockSpec((1, G, tk, D), kv_map)
    o_spec = pl.BlockSpec((1, tq, G * D), lambda bh, qi, ki: (bh, qi, 0))

    in_specs = [q_spec, kv_spec, kv_spec]
    args = [qf, kf, vf]

    mask_per_head = False
    if has_mask:
        if mask.ndim != 4:
            raise ValueError("mask must be 4-D, broadcastable to (B, H, S, S)")
        Bm, Hm = mask.shape[0], mask.shape[1]
        if mask.shape[2] != S or mask.shape[3] != S:
            mask = jnp.broadcast_to(mask, (Bm, Hm, S, S))
        if Bm not in (1, B) or Hm not in (1, H):
            mask = jnp.broadcast_to(mask, (B, H, S, S))
            Bm, Hm = B, H
        m8 = mask.astype(jnp.int8)  # 4x fewer HBM bytes than int32

        if Hm == 1:
            # Shared across heads: NOT broadcast over B*H in HBM.
            def mask_map(bh, qi, ki, _Bm=Bm):
                b = (bh // HG) if _Bm != 1 else 0
                return (b, 0, qi, ki)
            in_specs.append(pl.BlockSpec((1, 1, tq, tk), mask_map))
            args.append(m8)
        else:
            mask_per_head = True
            m8 = m8.reshape(Bm, HG, G, S, S)

            def mask_map(bh, qi, ki, _Bm=Bm):
                b = (bh // HG) if _Bm != 1 else 0
                hg = bh % HG
                return (b, hg, 0, qi, ki)
            in_specs.append(pl.BlockSpec((1, 1, G, tq, tk), mask_map))
            args.append(m8)

    cfg = dict(scale=scale, G=G, tq=tq, tk=tk, causal=is_causal,
               mask_per_head=mask_per_head)
    kernel = functools.partial(_kernel_mask if has_mask else _kernel_nomask,
                               **cfg)

    # Rough per-step VMEM estimate; raise the scoped limit only when the
    # default (16 MiB on v5e) would be tight.
    in_bytes = jnp.dtype(q.dtype).itemsize
    out_bytes = jnp.dtype(out_dtype).itemsize
    est = 2 * (G * tq * D * in_bytes + 2 * G * tk * D * in_bytes
               + tq * G * D * out_bytes)
    if has_mask:
        est += 2 * (G if mask_per_head else 1) * tq * tk
    est += G * tq * D * 4 + 2 * G * tq * 4      # m/l/acc scratch
    est += 4 * tq * tk * 4                      # s/p temporaries (rough)
    vmem_limit = 48 * 1024 * 1024 if est > 12 * 1024 * 1024 else None

    out = pl.pallas_call(
        kernel,
        out_shape=jax.ShapeDtypeStruct((BHG, S, G * D), out_dtype),
        grid_spec=pltpu.PrefetchScalarGridSpec(
            num_scalar_prefetch=0,
            grid=(BHG, nq, nk),                 # reduction (KV) axis last
            in_specs=in_specs,
            out_specs=o_spec,
            scratch_shapes=[
                pltpu.VMEM((G, tq, 1), jnp.float32),   # running max m
                pltpu.VMEM((G, tq, 1), jnp.float32),   # running denom l
                pltpu.VMEM((G, tq, D), jnp.float32),   # output accumulator
            ],
        ),
        compiler_params=pltpu.CompilerParams(
            dimension_semantics=("parallel", "parallel", "arbitrary"),
            vmem_limit_bytes=vmem_limit),
    )(*args)

    # Un-fold heads: (BHG, S, G*D) -> (B, H, S, D).  Pure layout plumbing.
    out = out.reshape(B, HG, S, G, D).transpose(0, 1, 3, 2, 4)
    return out.reshape(B, H, S, D)


# ---------------------------------------------------------------------------
# Reference + self-test
# ---------------------------------------------------------------------------
def _reference(q, k, v, mask=None, is_causal=False):
    d = q.shape[-1]
    s = jnp.einsum("bhqd,bhkd->bhqk", q, k) / math.sqrt(d)
    if is_causal:
        S = q.shape[2]
        keep = jnp.tril(jnp.ones((S, S), dtype=bool))[None, None]
        s = jnp.where(keep, s, NEG_INF)
    elif mask is not None:
        s = jnp.where(mask == 0, NEG_INF, s)
    p = jax.nn.softmax(s, axis=-1)
    return jnp.einsum("bhqk,bhkd->bhqd", p, v)


if __name__ == "__main__":
    key = jax.random.PRNGKey(0)
    ks = jax.random.split(key, 6)
    TOL = 1e-2  # loosened for approx (EUP) reciprocal in the normalization

    # --- 1) small, no mask (head folding G=2) -------------------------------
    B, H, S, D = 2, 2, 8, 32
    q = jax.random.normal(ks[0], (B, H, S, D), dtype=jnp.float32)
    k = jax.random.normal(ks[1], (B, H, S, D), dtype=jnp.float32)
    v = jax.random.normal(ks[2], (B, H, S, D), dtype=jnp.float32)
    out = jax.block_until_ready(scaled_dot_product_attention(q, k, v))
    ref = _reference(q, k, v)
    assert jnp.allclose(out, ref, atol=TOL, rtol=TOL), "nomask mismatch"

    # --- 2) explicit per-(b,h) mask (per-head mask path) ---------------------
    tril = jnp.tril(jnp.ones((S, S), dtype=jnp.int32))[None, None]
    mask = jnp.broadcast_to(tril, (B, H, S, S))
    out_m = jax.block_until_ready(scaled_dot_product_attention(q, k, v, mask))
    ref_m = _reference(q, k, v, mask)
    assert jnp.allclose(out_m, ref_m, atol=TOL, rtol=TOL), "mask mismatch"

    # --- 3) is_causal (in-kernel mask) must match the explicit causal mask ---
    out_c = jax.block_until_ready(
        scaled_dot_product_attention(q, k, v, is_causal=True))
    assert jnp.allclose(out_c, ref_m, atol=TOL, rtol=TOL), "causal mismatch"

    # --- 4) larger shape: tiling + causal skip + lane-dense fold (G*D=128) ---
    B2, H2, S2, D2 = 1, 2, 256, 64
    q2 = jax.random.normal(ks[3], (B2, H2, S2, D2), dtype=jnp.float32)
    k2 = jax.random.normal(ks[4], (B2, H2, S2, D2), dtype=jnp.float32)
    v2 = jax.random.normal(ks[5], (B2, H2, S2, D2), dtype=jnp.float32)
    out2 = jax.block_until_ready(
        scaled_dot_product_attention(q2, k2, v2, is_causal=True,
                                     block_q=128, block_k=128))
    ref2 = _reference(q2, k2, v2, is_causal=True)
    assert jnp.allclose(out2, ref2, atol=TOL, rtol=TOL), "tiled causal mismatch"

    # --- 4b) same shape, shared (1,1,S,S) explicit mask path -----------------
    mask2 = jnp.tril(jnp.ones((S2, S2), dtype=jnp.int32))[None, None]
    out2m = jax.block_until_ready(
        scaled_dot_product_attention(q2, k2, v2, mask2,
                                     block_q=128, block_k=128))
    assert jnp.allclose(out2m, ref2, atol=TOL, rtol=TOL), "shared-mask mismatch"

    # --- 5) bf16 operands (v6e/v7x MXU-friendly), f32 accumulation -----------
    out_bf = jax.block_until_ready(
        scaled_dot_product_attention(q2, k2, v2, is_causal=True,
                                     block_q=128, block_k=128,
                                     operand_dtype=jnp.bfloat16))
    ref_bf = _reference(q2.astype(jnp.bfloat16).astype(jnp.float32),
                        k2.astype(jnp.bfloat16).astype(jnp.float32),
                        v2.astype(jnp.bfloat16).astype(jnp.float32),
                        is_causal=True)
    assert jnp.allclose(out_bf, ref_bf, atol=3e-2, rtol=3e-2), "bf16 mismatch"

    print("KERNEL_OK")
</pallas_src>

<mosaic_0001>
module attributes {stable_mosaic.version = 11 : i64} {
  func.func @_kernel_nomask(%arg0: i32, %arg1: i32, %arg2: i32, %arg3: memref<1x2x8x32xf32, #tpu.memory_space<vmem>>, %arg4: memref<1x2x8x32xf32, #tpu.memory_space<vmem>>, %arg5: memref<1x2x8x32xf32, #tpu.memory_space<vmem>>, %arg6: memref<1x8x64xf32, #tpu.memory_space<vmem>>, %arg7: memref<2x8x1xf32, #tpu.memory_space<vmem>>, %arg8: memref<2x8x1xf32, #tpu.memory_space<vmem>>, %arg9: memref<2x8x32xf32, #tpu.memory_space<vmem>>) attributes {dimension_semantics = [#tpu.dimension_semantics<parallel>, #tpu.dimension_semantics<parallel>, #tpu.dimension_semantics<arbitrary>], iteration_bounds = array<i64: 2, 1, 1>, scalar_prefetch = 0 : i64, scratch_operands = 3 : i64, tpu.core_type = #tpu.core_type<tc>, window_params = [{transform_indices = @transform_0, window_bounds = array<i64: 1, 2, 8, 32>}, {transform_indices = @transform_1, window_bounds = array<i64: 1, 2, 8, 32>}, {transform_indices = @transform_2, window_bounds = array<i64: 1, 2, 8, 32>}, {transform_indices = @transform_3, window_bounds = array<i64: 1, 8, 64>}]} {
    %c0_i32 = arith.constant 0 : i32
    %0 = arith.cmpi eq, %arg2, %c0_i32 : i32
    %1 = arith.extui %0 : i1 to i32
    %c0_i32_0 = arith.constant 0 : i32
    %2 = arith.cmpi ne, %1, %c0_i32_0 : i32
    scf.if %2 {
      %cst_70 = arith.constant -1.000000e+30 : f32
      %86 = vector.broadcast %cst_70 : f32 to vector<2x8x1xf32>
      %c0_71 = arith.constant 0 : index
      %c0_72 = arith.constant 0 : index
      %c0_73 = arith.constant 0 : index
      %87 = vector.load %arg7[%c0_71, %c0_72, %c0_73] : memref<2x8x1xf32, #tpu.memory_space<vmem>>, vector<2x8x1xf32>
      tpu.vector_store %arg7[%c0_71, %c0_72, %c0_73], %86 {strides = array<i32>} : memref<2x8x1xf32, #tpu.memory_space<vmem>>, vector<2x8x1xf32>,
      %cst_74 = arith.constant 0.000000e+00 : f32
      %88 = vector.broadcast %cst_74 : f32 to vector<2x8x1xf32>
      %c0_75 = arith.constant 0 : index
      %c0_76 = arith.constant 0 : index
      %c0_77 = arith.constant 0 : index
      %89 = vector.load %arg8[%c0_75, %c0_76, %c0_77] : memref<2x8x1xf32, #tpu.memory_space<vmem>>, vector<2x8x1xf32>
      tpu.vector_store %arg8[%c0_75, %c0_76, %c0_77], %88 {strides = array<i32>} : memref<2x8x1xf32, #tpu.memory_space<vmem>>, vector<2x8x1xf32>,
      %cst_78 = arith.constant 0.000000e+00 : f32
      %90 = vector.broadcast %cst_78 : f32 to vector<2x8x32xf32>
      %c0_79 = arith.constant 0 : index
      %c0_80 = arith.constant 0 : index
      %c0_81 = arith.constant 0 : index
      %91 = vector.load %arg9[%c0_79, %c0_80, %c0_81] : memref<2x8x32xf32, #tpu.memory_space<vmem>>, vector<2x8x32xf32>
      tpu.vector_store %arg9[%c0_79, %c0_80, %c0_81], %90 {strides = array<i32>} : memref<2x8x32xf32, #tpu.memory_space<vmem>>, vector<2x8x32xf32>,
    } else {
    }
    %c0 = arith.constant 0 : index
    %c0_1 = arith.constant 0 : index
    %c0_2 = arith.constant 0 : index
    %c0_3 = arith.constant 0 : index
    %3 = vector.load %arg3[%c0, %c0_1, %c0_2, %c0_3] : memref<1x2x8x32xf32, #tpu.memory_space<vmem>>, vector<1x1x8x32xf32>
    %4 = vector.shape_cast %3 : vector<1x1x8x32xf32> to vector<8x32xf32>
    %cst = arith.constant 0.176776692 : f32
    %5 = vector.broadcast %cst : f32 to vector<8x32xf32>
    %6 = arith.mulf %4, %5 : vector<8x32xf32>
    %c0_4 = arith.constant 0 : index
    %c0_5 = arith.constant 0 : index
    %c0_6 = arith.constant 0 : index
    %c0_7 = arith.constant 0 : index
    %7 = vector.load %arg4[%c0_4, %c0_5, %c0_6, %c0_7] : memref<1x2x8x32xf32, #tpu.memory_space<vmem>>, vector<1x1x8x32xf32>
    %8 = vector.shape_cast %7 : vector<1x1x8x32xf32> to vector<8x32xf32>
    %c0_8 = arith.constant 0 : index
    %c0_9 = arith.constant 0 : index
    %c0_10 = arith.constant 0 : index
    %c0_11 = arith.constant 0 : index
    %9 = vector.load %arg5[%c0_8, %c0_9, %c0_10, %c0_11] : memref<1x2x8x32xf32, #tpu.memory_space<vmem>>, vector<1x1x8x32xf32>
    %10 = vector.shape_cast %9 : vector<1x1x8x32xf32> to vector<8x32xf32>
    %cst_12 = arith.constant dense<0.000000e+00> : vector<8x8xf32>
    %11 = tpu.matmul %6, %8, %cst_12 {dimension_numbers = #tpu.dot_dimension_numbers<[1], [1], [0], [0], [0, 0, 1, 0], [], []>} : vector<8x32xf32>, vector<8x32xf32>, vector<8x8xf32> -> vector<8x8xf32>
    %c0_13 = arith.constant 0 : index
    %c0_14 = arith.constant 0 : index
    %c0_15 = arith.constant 0 : index
    %12 = vector.load %arg7[%c0_13, %c0_14, %c0_15] : memref<2x8x1xf32, #tpu.memory_space<vmem>>, vector<1x8x1xf32>
    %13 = vector.shape_cast %12 : vector<1x8x1xf32> to vector<8x1xf32>
    %cst_16 = arith.constant dense<0xFF800000> : vector<8xf32>
    %14 = vector.multi_reduction <maximumf>, %11, %cst_16 [1] : vector<8x8xf32> to vector<8xf32>
    %15 = vector.shape_cast %14 : vector<8xf32> to vector<8x1xf32>
    %16 = arith.maximumf %13, %15 : vector<8x1xf32>
    %17 = arith.subf %13, %16 : vector<8x1xf32>
    %18 = math.exp %17 : vector<8x1xf32>
    %19 = vector.broadcast %16 : vector<8x1xf32> to vector<8x8xf32>
    %20 = arith.subf %11, %19 : vector<8x8xf32>
    %21 = math.exp %20 : vector<8x8xf32>
    %c0_17 = arith.constant 0 : index
    %c0_18 = arith.constant 0 : index
    %c0_19 = arith.constant 0 : index
    %22 = vector.load %arg8[%c0_17, %c0_18, %c0_19] : memref<2x8x1xf32, #tpu.memory_space<vmem>>, vector<1x8x1xf32>
    %23 = vector.shape_cast %22 : vector<1x8x1xf32> to vector<8x1xf32>
    %24 = arith.mulf %18, %23 : vector<8x1xf32>
    %cst_20 = arith.constant dense<0.000000e+00> : vector<8xf32>
    %25 = vector.multi_reduction <add>, %21, %cst_20 [1] : vector<8x8xf32> to vector<8xf32>
    %26 = vector.shape_cast %25 : vector<8xf32> to vector<8x1xf32>
    %27 = arith.addf %24, %26 : vector<8x1xf32>
    %c0_21 = arith.constant 0 : index
    %c0_22 = arith.constant 0 : index
    %c0_23 = arith.constant 0 : index
    %28 = vector.load %arg8[%c0_21, %c0_22, %c0_23] : memref<2x8x1xf32, #tpu.memory_space<vmem>>, vector<1x8x1xf32>
    %29 = vector.shape_cast %28 : vector<1x8x1xf32> to vector<8x1xf32>
    %30 = vector.shape_cast %27 : vector<8x1xf32> to vector<1x8x1xf32>
    tpu.vector_store %arg8[%c0_21, %c0_22, %c0_23], %30 {strides = array<i32>} : memref<2x8x1xf32, #tpu.memory_space<vmem>>, vector<1x8x1xf32>,
    %c0_24 = arith.constant 0 : index
    %c0_25 = arith.constant 0 : index
    %c0_26 = arith.constant 0 : index
    %31 = vector.load %arg9[%c0_24, %c0_25, %c0_26] : memref<2x8x32xf32, #tpu.memory_space<vmem>>, vector<1x8x32xf32>
    %32 = vector.shape_cast %31 : vector<1x8x32xf32> to vector<8x32xf32>
    %33 = vector.broadcast %18 : vector<8x1xf32> to vector<8x32xf32>
    %34 = arith.mulf %33, %32 : vector<8x32xf32>
    %cst_27 = arith.constant dense<0.000000e+00> : vector<8x32xf32>
    %35 = tpu.matmul %21, %10, %cst_27 {dimension_numbers = #tpu.dot_dimension_numbers<[1], [0], [0], [1], [0, 0, 1, 1], [], []>} : vector<8x8xf32>, vector<8x32xf32>, vector<8x32xf32> -> vector<8x32xf32>
    %36 = arith.addf %34, %35 : vector<8x32xf32>
    %c0_28 = arith.constant 0 : index
    %c0_29 = arith.constant 0 : index
    %c0_30 = arith.constant 0 : index
    %37 = vector.load %arg9[%c0_28, %c0_29, %c0_30] : memref<2x8x32xf32, #tpu.memory_space<vmem>>, vector<1x8x32xf32>
    %38 = vector.shape_cast %37 : vector<1x8x32xf32> to vector<8x32xf32>
    %39 = vector.shape_cast %36 : vector<8x32xf32> to vector<1x8x32xf32>
    tpu.vector_store %arg9[%c0_28, %c0_29, %c0_30], %39 {strides = array<i32>} : memref<2x8x32xf32, #tpu.memory_space<vmem>>, vector<1x8x32xf32>,
    %c0_31 = arith.constant 0 : index
    %c0_32 = arith.constant 0 : index
    %c0_33 = arith.constant 0 : index
    %40 = vector.load %arg7[%c0_31, %c0_32, %c0_33] : memref<2x8x1xf32, #tpu.memory_space<vmem>>, vector<1x8x1xf32>
    %41 = vector.shape_cast %40 : vector<1x8x1xf32> to vector<8x1xf32>
    %42 = vector.shape_cast %16 : vector<8x1xf32> to vector<1x8x1xf32>
    tpu.vector_store %arg7[%c0_31, %c0_32, %c0_33], %42 {strides = array<i32>} : memref<2x8x1xf32, #tpu.memory_space<vmem>>, vector<1x8x1xf32>,
    %c0_34 = arith.constant 0 : index
    %c1 = arith.constant 1 : index
    %c0_35 = arith.constant 0 : index
    %c0_36 = arith.constant 0 : index
    %43 = vector.load %arg3[%c0_34, %c1, %c0_35, %c0_36] : memref<1x2x8x32xf32, #tpu.memory_space<vmem>>, vector<1x1x8x32xf32>
    %44 = vector.shape_cast %43 : vector<1x1x8x32xf32> to vector<8x32xf32>
    %cst_37 = arith.constant 0.176776692 : f32
    %45 = vector.broadcast %cst_37 : f32 to vector<8x32xf32>
    %46 = arith.mulf %44, %45 : vector<8x32xf32>
    %c0_38 = arith.constant 0 : index
    %c1_39 = arith.constant 1 : index
    %c0_40 = arith.constant 0 : index
    %c0_41 = arith.constant 0 : index
    %47 = vector.load %arg4[%c0_38, %c1_39, %c0_40, %c0_41] : memref<1x2x8x32xf32, #tpu.memory_space<vmem>>, vector<1x1x8x32xf32>
    %48 = vector.shape_cast %47 : vector<1x1x8x32xf32> to vector<8x32xf32>
    %c0_42 = arith.constant 0 : index
    %c1_43 = arith.constant 1 : index
    %c0_44 = arith.constant 0 : index
    %c0_45 = arith.constant 0 : index
    %49 = vector.load %arg5[%c0_42, %c1_43, %c0_44, %c0_45] : memref<1x2x8x32xf32, #tpu.memory_space<vmem>>, vector<1x1x8x32xf32>
    %50 = vector.shape_cast %49 : vector<1x1x8x32xf32> to vector<8x32xf32>
    %cst_46 = arith.constant dense<0.000000e+00> : vector<8x8xf32>
    %51 = tpu.matmul %46, %48, %cst_46 {dimension_numbers = #tpu.dot_dimension_numbers<[1], [1], [0], [0], [0, 0, 1, 0], [], []>} : vector<8x32xf32>, vector<8x32xf32>, vector<8x8xf32> -> vector<8x8xf32>
    %c1_47 = arith.constant 1 : index
    %c0_48 = arith.constant 0 : index
    %c0_49 = arith.constant 0 : index
    %52 = vector.load %arg7[%c1_47, %c0_48, %c0_49] : memref<2x8x1xf32, #tpu.memory_space<vmem>>, vector<1x8x1xf32>
    %53 = vector.shape_cast %52 : vector<1x8x1xf32> to vector<8x1xf32>
    %cst_50 = arith.constant dense<0xFF800000> : vector<8xf32>
    %54 = vector.multi_reduction <maximumf>, %51, %cst_50 [1] : vector<8x8xf32> to vector<8xf32>
    %55 = vector.shape_cast %54 : vector<8xf32> to vector<8x1xf32>
    %56 = arith.maximumf %53, %55 : vector<8x1xf32>
    %57 = arith.subf %53, %56 : vector<8x1xf32>
    %58 = math.exp %57 : vector<8x1xf32>
    %59 = vector.broadcast %56 : vector<8x1xf32> to vector<8x8xf32>
    %60 = arith.subf %51, %59 : vector<8x8xf32>
    %61 = math.exp %60 : vector<8x8xf32>
    %c1_51 = arith.constant 1 : index
    %c0_52 = arith.constant 0 : index
    %c0_53 = arith.constant 0 : index
    %62 = vector.load %arg8[%c1_51, %c0_52, %c0_53] : memref<2x8x1xf32, #tpu.memory_space<vmem>>, vector<1x8x1xf32>
    %63 = vector.shape_cast %62 : vector<1x8x1xf32> to vector<8x1xf32>
    %64 = arith.mulf %58, %63 : vector<8x1xf32>
    %cst_54 = arith.constant dense<0.000000e+00> : vector<8xf32>
    %65 = vector.multi_reduction <add>, %61, %cst_54 [1] : vector<8x8xf32> to vector<8xf32>
    %66 = vector.shape_cast %65 : vector<8xf32> to vector<8x1xf32>
    %67 = arith.addf %64, %66 : vector<8x1xf32>
    %c1_55 = arith.constant 1 : index
    %c0_56 = arith.constant 0 : index
    %c0_57 = arith.constant 0 : index
    %68 = vector.load %arg8[%c1_55, %c0_56, %c0_57] : memref<2x8x1xf32, #tpu.memory_space<vmem>>, vector<1x8x1xf32>
    %69 = vector.shape_cast %68 : vector<1x8x1xf32> to vector<8x1xf32>
    %70 = vector.shape_cast %67 : vector<8x1xf32> to vector<1x8x1xf32>
    tpu.vector_store %arg8[%c1_55, %c0_56, %c0_57], %70 {strides = array<i32>} : memref<2x8x1xf32, #tpu.memory_space<vmem>>, vector<1x8x1xf32>,
    %c1_58 = arith.constant 1 : index
    %c0_59 = arith.constant 0 : index
    %c0_60 = arith.constant 0 : index
    %71 = vector.load %arg9[%c1_58, %c0_59, %c0_60] : memref<2x8x32xf32, #tpu.memory_space<vmem>>, vector<1x8x32xf32>
    %72 = vector.shape_cast %71 : vector<1x8x32xf32> to vector<8x32xf32>
    %73 = vector.broadcast %58 : vector<8x1xf32> to vector<8x32xf32>
    %74 = arith.mulf %73, %72 : vector<8x32xf32>
    %cst_61 = arith.constant dense<0.000000e+00> : vector<8x32xf32>
    %75 = tpu.matmul %61, %50, %cst_61 {dimension_numbers = #tpu.dot_dimension_numbers<[1], [0], [0], [1], [0, 0, 1, 1], [], []>} : vector<8x8xf32>, vector<8x32xf32>, vector<8x32xf32> -> vector<8x32xf32>
    %76 = arith.addf %74, %75 : vector<8x32xf32>
    %c1_62 = arith.constant 1 : index
    %c0_63 = arith.constant 0 : index
    %c0_64 = arith.constant 0 : index
    %77 = vector.load %arg9[%c1_62, %c0_63, %c0_64] : memref<2x8x32xf32, #tpu.memory_space<vmem>>, vector<1x8x32xf32>
    %78 = vector.shape_cast %77 : vector<1x8x32xf32> to vector<8x32xf32>
    %79 = vector.shape_cast %76 : vector<8x32xf32> to vector<1x8x32xf32>
    tpu.vector_store %arg9[%c1_62, %c0_63, %c0_64], %79 {strides = array<i32>} : memref<2x8x32xf32, #tpu.memory_space<vmem>>, vector<1x8x32xf32>,
    %c1_65 = arith.constant 1 : index
    %c0_66 = arith.constant 0 : index
    %c0_67 = arith.constant 0 : index
    %80 = vector.load %arg7[%c1_65, %c0_66, %c0_67] : memref<2x8x1xf32, #tpu.memory_space<vmem>>, vector<1x8x1xf32>
    %81 = vector.shape_cast %80 : vector<1x8x1xf32> to vector<8x1xf32>
    %82 = vector.shape_cast %56 : vector<8x1xf32> to vector<1x8x1xf32>
    tpu.vector_store %arg7[%c1_65, %c0_66, %c0_67], %82 {strides = array<i32>} : memref<2x8x1xf32, #tpu.memory_space<vmem>>, vector<1x8x1xf32>,
    %c0_i32_68 = arith.constant 0 : i32
    %83 = arith.cmpi eq, %arg2, %c0_i32_68 : i32
    %84 = arith.extui %83 : i1 to i32
    %c0_i32_69 = arith.constant 0 : i32
    %85 = arith.cmpi ne, %84, %c0_i32_69 : i32
    scf.if %85 {
      %c0_70 = arith.constant 0 : index
      %c0_71 = arith.constant 0 : index
      %c0_72 = arith.constant 0 : index
      %86 = vector.load %arg8[%c0_70, %c0_71, %c0_72] : memref<2x8x1xf32, #tpu.memory_space<vmem>>, vector<1x8x1xf32>
      %87 = vector.shape_cast %86 : vector<1x8x1xf32> to vector<8x1xf32>
      %88 = tpu.reciprocal %87 {approx = true} : vector<8x1xf32> -> vector<8x1xf32>
      %c0_73 = arith.constant 0 : index
      %c0_74 = arith.constant 0 : index
      %c0_75 = arith.constant 0 : index
      %89 = vector.load %arg9[%c0_73, %c0_74, %c0_75] : memref<2x8x32xf32, #tpu.memory_space<vmem>>, vector<1x8x32xf32>
      %90 = vector.shape_cast %89 : vector<1x8x32xf32> to vector<8x32xf32>
      %91 = vector.broadcast %88 : vector<8x1xf32> to vector<8x32xf32>
      %92 = arith.mulf %90, %91 : vector<8x32xf32>
      %c1_76 = arith.constant 1 : index
      %c0_77 = arith.constant 0 : index
      %c0_78 = arith.constant 0 : index
      %93 = vector.load %arg8[%c1_76, %c0_77, %c0_78] : memref<2x8x1xf32, #tpu.memory_space<vmem>>, vector<1x8x1xf32>
      %94 = vector.shape_cast %93 : vector<1x8x1xf32> to vector<8x1xf32>
      %95 = tpu.reciprocal %94 {approx = true} : vector<8x1xf32> -> vector<8x1xf32>
      %c1_79 = arith.constant 1 : index
      %c0_80 = arith.constant 0 : index
      %c0_81 = arith.constant 0 : index
      %96 = vector.load %arg9[%c1_79, %c0_80, %c0_81] : memref<2x8x32xf32, #tpu.memory_space<vmem>>, vector<1x8x32xf32>
      %97 = vector.shape_cast %96 : vector<1x8x32xf32> to vector<8x32xf32>
      %98 = vector.broadcast %95 : vector<8x1xf32> to vector<8x32xf32>
      %99 = arith.mulf %97, %98 : vector<8x32xf32>
      %100 = tpu.concatenate %92, %99 in 1 : vector<8x32xf32>, vector<8x32xf32> -> vector<8x64xf32>
      %c0_82 = arith.constant 0 : index
      %c0_83 = arith.constant 0 : index
      %c0_84 = arith.constant 0 : index
      %101 = vector.load %arg6[%c0_82, %c0_83, %c0_84] : memref<1x8x64xf32, #tpu.memory_space<vmem>>, vector<1x8x64xf32>
      %102 = vector.shape_cast %101 : vector<1x8x64xf32> to vector<8x64xf32>
      %103 = vector.shape_cast %100 : vector<8x64xf32> to vector<1x8x64xf32>
      tpu.vector_store %arg6[%c0_82, %c0_83, %c0_84], %103 {strides = array<i32>} : memref<1x8x64xf32, #tpu.memory_space<vmem>>, vector<1x8x64xf32>,
    } else {
    }
    return
  }
  func.func @transform_0(%arg0: i32, %arg1: i32, %arg2: i32) -> (i32, i32, i32, i32) {
    %c0_i32 = arith.constant 0 : i32
    %c0_i32_0 = arith.constant 0 : i32
    %c0_i32_1 = arith.constant 0 : i32
    return %arg0, %c0_i32, %arg1, %c0_i32_0 : i32, i32, i32, i32
  }
  func.func @transform_1(%arg0: i32, %arg1: i32, %arg2: i32) -> (i32, i32, i32, i32) {
    %c0_i32 = arith.constant 0 : i32
    %c0_i32_0 = arith.constant 0 : i32
    %c0_i32_1 = arith.constant 0 : i32
    return %arg0, %c0_i32, %arg2, %c0_i32_0 : i32, i32, i32, i32
  }
  func.func @transform_2(%arg0: i32, %arg1: i32, %arg2: i32) -> (i32, i32, i32, i32) {
    %c0_i32 = arith.constant 0 : i32
    %c0_i32_0 = arith.constant 0 : i32
    %c0_i32_1 = arith.constant 0 : i32
    return %arg0, %c0_i32, %arg2, %c0_i32_0 : i32, i32, i32, i32
  }
  func.func @transform_3(%arg0: i32, %arg1: i32, %arg2: i32) -> (i32, i32, i32) {
    %c0_i32 = arith.constant 0 : i32
    %c0_i32_0 = arith.constant 0 : i32
    return %arg0, %arg1, %c0_i32 : i32, i32, i32
  }
}

</mosaic_0001>

<bundles_post_ra>
// kernel: tpu_custom_call.1
= control target key start
LH: loop header
LB: loop body
LE: loop exit
PB: predicated region body
PF: predicated region fallthrough
CT: control target
= control target key end

     0   :  { %s1544_s0 = inlined_call_operand.hbm [shape: f32[2,2,8,32], index: 0, kind: input, shape index: {}]   ;;  %s1545_s1 = inlined_call_operand.hbm [shape: f32[2,2,8,32], index: 1, kind: input, shape index: {}]   ;;  %s1546_s2 = inlined_call_operand.hbm [shape: f32[2,2,8,32], index: 2, kind: input, shape index: {}]   ;;  %s1547_s3 = inlined_call_operand.hbm [shape: f32[2,8,64], index: 3, kind: output, shape index: {}]  }
   0x1   :  { %1557 = sst [smem:[#allocation18_spill]] %s1545_s1 }
   0x2   :  { %8 = vsyncpa [#allocation6], 0 }
   0x3   :  { %10 = vsyncpa [#allocation6 + $0x1], 0 }
   0x4   :  { %11 = vsyncpa [#allocation9], 0 }
   0x5   :  { %13 = vsyncpa [#allocation9 + $0x1], 0 }
   0x6   :  { %14 = vsyncpa [#allocation7], 0 }
   0x7   :  { %16 = vsyncpa [#allocation7 + $0x1], 0  ;;  %s1227_s12 = smov 0   ;;  %s1229_s13 = smov 0  }
   0x8   :  { %s1231_s14 = smov 0   ;;  %s1233_s15 = smov 0  }
   0x9   :  { %s1235_s16 = smov 0   ;;  %s1237_s17 = smov 0  }
   0xa LB: > { %1558 = sst [smem:[#allocation15_spill]] %s1190_s16  ;;  %s1258_s18 = sadd.s32 4294967295, %s1194_s17   ;;  %s1194_s17 = sphi %s1237_s17, %s22_s17   ;;  %s1190_s16 = sphi %s1235_s16, %s1581_s16   ;;  %s1186_s15 = sphi %s1233_s15, %s1580_s15   ;;  %s1182_s14 = sphi %s1231_s14, %s1584_s14   ;;  %s1178_s13 = sphi %s1229_s13, %s1583_s13   ;;  %s1174_s12 = sphi %s1227_s12, %s1582_s12  }
   0xb   : > { %s864_s19 = sadd.s32 4294967294, %s1194_s17   ;;  %s41_s20 = sadd.s32 1, %s1190_s16 }
   0xc   : > { %s50_s21 = sadd.s32 1, %s1182_s14  ;;  %p43_p0 = scmp.ge.s32.totalorder %s41_s20, 2 }
   0xd   : > { %p57_p1 = scmp.ne.s32.totalorder %s1182_s14, %s1178_s13  ;;  %p58_p2 = scmp.eq.s32.totalorder %s1194_s17, 0 }
   0xe   : > { %p63_p3 = scmp.ne.s32.totalorder %s1178_s13, %s1174_s12  ;;  %s1586_s20 = smov (%p43_p0, %s41_s20), 0 }
   0xf   : > { %1559 = sst [smem:[#allocation16_spill]] %s1586_s20  ;;  %p1270_p4 = por %p58_p2, %p57_p1 }
  0x10   : > { %p64_p5 = scmp.eq.s32.totalorder %s1258_s18, 0  ;;  %s45_s23 = ssub.s32 %s1190_s16, %s1586_s20 }
  0x11   : > { %p145_p6 = scmp.eq.s32.totalorder %s1258_s18, 1  ;;  %p48_p7 = scmp.eq.s32.totalorder %s45_s23, 0 }
  0x12   : > { %p1278_p8 = por %p64_p5, %p63_p3  ;;  %p151_p10 = scmp.eq.s32.totalorder %s864_s19, 1 }
  0x13   : > { %p1282_p9 = por %p145_p6, %p57_p1  ;;  %p947_p13 = scmp.lt.s32.totalorder %s1194_s17, 2 }
  0x14   : > { %s1561_s24 = scalar_select %p1278_p8, 1, 0 }
  0x15   : > { %s1562_s25 = scalar_select %p1282_p9, 1, 0 }
  0x16   : > { %s1287_s26 = scalar_select %p48_p7, %s1182_s14, %s50_s21  }
  0x17   : > { %p1289_p11 = por %p151_p10, %p63_p3  ;;  %s1550_s28 = sand.u32 1, %s1182_s14  }
  0x18   : > { %1563 = sst [smem:[#allocation17_spill]] %s1287_s26  ;;  %s1298_s29 = sshll.u32 %s1550_s28, 4 }
  0x19   : > { %s1564_s27 = scalar_select %p1289_p11, 1, 0 }
  0x1a   : > { %s1301_s30 = sshll.u32 %s1190_s16, 8  ;;  %p1305_p0 = pnand %p947_p13, %p1270_p4 }
  0x1b   : > { %s193_s5 = sand.u32 1, %s1194_s17   ;;  %s1566_s1 = sld [smem:[#allocation18_spill]] }
  0x1c   : > { %s197_s9 = scalar_lea.vmem [#allocation8], %s1298_s29  ;;  %s1321_s11 = scalar_lea.sflag [#allocation9], %s193_s5 }
  0x1d   : > { %s205_s10 = sshll.u32 %s197_s9, 4  ;;  %p1327_p4 = pneg %p1305_p0  ;;  %s1318_s10 = int_to_ptr.vmem [resolvable:$true] %s205_s10 }
  0x21   : > { %s1314_s8 = scalar_lea.hbm %s1566_s1, %s1301_s30  ;;  %s1023_s6 = scalar_lea.hbm %s1566_s1, 512 }
  0x22   : > { %s1018_s19 = scalar_lea.hbm %s1314_s8, 256  ;;  %p1024_p7 = scmp.lt.u32.totalorder %s1314_s8, %s1566_s1 }
  0x23   : > { %p1019_p3 = scmp.ne.s32.totalorder %s1314_s8, %s1018_s19  ;;  %p1025_p10 = scmp.lt.u32.totalorder %s1023_s6, %s1018_s19 }
  0x24   : > { %p1027_p12 = scmp.lt.u32.totalorder %s1018_s19, %s1314_s8 }
  0x25   : > { %p1021_p5 = pnand %p1327_p4, %p1019_p3  ;;  %p1026_p13 = por %p1025_p10, %p1024_p7 }
  0x27   : > { %p1022_p6 = pneg %p1021_p5  ;;  %p1028_p1 = por %p1027_p12, %p1026_p13 }
  0x29   : > { %p1029_p2 = pnand %p1028_p1, %p1022_p6 }
  0x2b   : > { %1032 = shalt.err (!%p1029_p2)
}
  0x2c   : > { %s1033_s5 = scalar_lea.vmem %s1318_s10, 256  ;;  %s1196_s22 = smov [#allocation8]  }
  0x2d   : > { %p1034_p3 = scmp.ne.s32.totalorder %s1318_s10, %s1033_s5  ;;  %s1038_s23 = sshll.u32 %s1196_s22, 4  ;;  %s1039_s23 = int_to_ptr.vmem [resolvable:$false] %s1038_s23 }
  0x2e   : > { %s1040_s7 = scalar_lea.vmem %s1039_s23, 512  ;;  %p1041_p9 = scmp.lt.s32.totalorder %s1318_s10, %s1039_s23 }
  0x2f   : > { %p1036_p5 = pnand %p1034_p3, %p1327_p4  ;;  %p1042_p8 = scmp.lt.s32.totalorder %s1040_s7, %s1033_s5 }
  0x31   : > { %p1037_p11 = pneg %p1036_p5  ;;  %p1043_p7 = por %p1042_p8, %p1041_p9 }
  0x33   : > { %p1044_p10 = pnand %p1043_p7, %p1037_p11 }
  0x35   : > { %1047 = shalt.err (!%p1044_p10)
}
  0x36   : > { %s1551_s19 = smov 128   ;;  %s1553_s6 = smov 8  }
  0x37   : > { %939 = dma.hbm_to_vmem [thread:$0]  (!%p1305_p0), %s1314_s8, 256, %s1318_s10, %s1321_s11, %s1551_s19, %s1551_s19, %s1553_s6  }
  0x38   : > { %p1568_p8 = scmp.lt.s32.totalorder %s1194_s17, 3  ;;  %p1569_p9 = scmp.ge.s32.totalorder %s1194_s17, 1 }
  0x39   : > { %s1366_s23 = scalar_lea.hbm %s1544_s0, %s1301_s30  ;;  %s175_s7 = scalar_lea.vmem [#allocation5], %s1298_s29 }
  0x3a   : > { %p1358_p11 = pnand %p1569_p9, %p1568_p8  ;;  %s183_s28 = sshll.u32 %s175_s7, 4  ;;  %s1369_s28 = int_to_ptr.vmem [resolvable:$true] %s183_s28 }
  0x3b   : > { %s1375_s19 = scalar_lea.hbm %s1546_s2, %s1301_s30  ;;  %s1571_s6 = sand.u32 1, %s1182_s14  }
  0x3c   : > { %s1570_s9 = scalar_select %p1358_p11, 1, 0 }
  0x3d   : > { %s1379_s1 = scalar_lea.sflag [#allocation6], %s1571_s6  ;;  %s1048_s20 = scalar_lea.hbm %s1366_s23, 256 }
  0x3e   : > { %p1049_p12 = scmp.ne.s32.totalorder %s1366_s23, %s1048_s20  ;;  %s1053_s16 = scalar_lea.hbm %s1544_s0, 512 }
  0x3f   : > { %p1054_p6 = scmp.lt.u32.totalorder %s1366_s23, %s1544_s0  ;;  %p1055_p13 = scmp.lt.u32.totalorder %s1053_s16, %s1048_s20 }
  0x40   : > { %p1051_p1 = pnand %p1049_p12, %p1327_p4  ;;  %p1057_p5 = scmp.lt.u32.totalorder %s1048_s20, %s1366_s23 }
  0x41   : > { %p1056_p3 = por %p1055_p13, %p1054_p6 }
  0x42   : > { %p1052_p2 = pneg %p1051_p1 }
  0x43   : > { %p1058_p7 = por %p1057_p5, %p1056_p3 }
  0x45   : > { %p1059_p10 = pnand %p1058_p7, %p1052_p2 }
  0x47   : > { %1062 = shalt.err (!%p1059_p10)
}
  0x48   : > { %s1063_s30 = scalar_lea.vmem %s1369_s28, 256  ;;  %s1199_s6 = smov [#allocation5]  }
  0x49   : > { %p1064_p8 = scmp.ne.s32.totalorder %s1369_s28, %s1063_s30  ;;  %s1068_s8 = sshll.u32 %s1199_s6, 4  ;;  %s1069_s8 = int_to_ptr.vmem [resolvable:$false] %s1068_s8 }
  0x4a   : > { %s1070_s26 = scalar_lea.vmem %s1069_s8, 512  ;;  %p1071_p1 = scmp.lt.s32.totalorder %s1369_s28, %s1069_s8 }
  0x4b   : > { %p1066_p9 = pnand %p1064_p8, %p1327_p4  ;;  %p1072_p11 = scmp.lt.s32.totalorder %s1070_s26, %s1063_s30 }
  0x4d   : > { %p1067_p12 = pneg %p1066_p9  ;;  %p1073_p6 = por %p1072_p11, %p1071_p1 }
  0x4f   : > { %p1074_p13 = pnand %p1073_p6, %p1067_p12 }
  0x51   : > { %1077 = shalt.err (!%p1074_p13)
}
  0x52   : > { %s1572_s16 = smov 8   ;;  %s1573_s20 = smov 128  }
  0x53   : > { %936 = dma.hbm_to_vmem [thread:$0]  (!%p1305_p0), %s1366_s23, 256, %s1369_s28, %s1379_s1, %s1573_s20, %s1573_s20, %s1572_s16  }
  0x54   : > { %s219_s10 = scalar_lea.vmem [#allocation10], %s1298_s29  ;;  %s1078_s22 = scalar_lea.hbm %s1375_s19, 256 }
  0x55   : > { %s227_s5 = sshll.u32 %s219_s10, 4  ;;  %p1079_p11 = scmp.ne.s32.totalorder %s1375_s19, %s1078_s22  ;;  %s1407_s5 = int_to_ptr.vmem [resolvable:$true] %s227_s5 }
  0x56   : > { %s1083_s6 = scalar_lea.hbm %s1546_s2, 512  ;;  %p1084_p5 = scmp.lt.u32.totalorder %s1375_s19, %s1546_s2 }
  0x57   : > { %p1081_p2 = pnand %p1079_p11, %p1327_p4  ;;  %p1085_p7 = scmp.lt.u32.totalorder %s1083_s6, %s1078_s22 }
  0x58   : > { %p1087_p8 = scmp.lt.u32.totalorder %s1078_s22, %s1375_s19 }
  0x59   : > { %p1082_p3 = pneg %p1081_p2  ;;  %p1086_p10 = por %p1085_p7, %p1084_p5 }
  0x5b   : > { %p1088_p9 = por %p1087_p8, %p1086_p10 }
  0x5d   : > { %p1089_p12 = pnand %p1088_p9, %p1082_p3 }
  0x5f   : > { %1092 = shalt.err (!%p1089_p12)
}
  0x60   : > { %s1093_s1 = scalar_lea.vmem %s1407_s5, 256  ;;  %s1200_s28 = smov [#allocation10]  }
  0x61   : > { %p1094_p1 = scmp.ne.s32.totalorder %s1407_s5, %s1093_s1  ;;  %s1098_s29 = sshll.u32 %s1200_s28, 4  ;;  %s1099_s29 = int_to_ptr.vmem [resolvable:$false] %s1098_s29 }
  0x62   : > { %s1100_s23 = scalar_lea.vmem %s1099_s29, 512  ;;  %p1101_p11 = scmp.lt.s32.totalorder %s1407_s5, %s1099_s29 }
  0x63   : > { %p1096_p6 = pnand %p1094_p1, %p1327_p4  ;;  %p1102_p2 = scmp.lt.s32.totalorder %s1100_s23, %s1093_s1 }
  0x65   : > { %p1097_p13 = pneg %p1096_p6  ;;  %p1103_p5 = por %p1102_p2, %p1101_p11 }
  0x67   : > { %p1104_p7 = pnand %p1103_p5, %p1097_p13 }
  0x69   : > { %1107 = shalt.err (!%p1104_p7)
}
  0x6a   : > { %942 = dma.hbm_to_vmem [thread:$0]  (!%p1305_p0), %s1375_s19, 256, %s1407_s5, %s1321_s11, %s1573_s20, %s1573_s20, %s1572_s16  }
  0x6b   : > { %p1574_p4 = scmp.ne.s32.totalorder %s1570_s9, 0 }
  0x6c   : > { %s1437_s21 = sand.u32 (!%p1574_p4), 1, %s1178_s13   ;;  %p1575_p3 = scmp.ne.s32.totalorder (!%p1574_p4), %s1561_s24, 0 }
  0x6d   : > { %239 = sbr.rel (%p1574_p4) target bundleno = 1554 (0x612), region = 32  ;;  %s1440_s10 = sshll.u32 (!%p1574_p4), %s1437_s21, 4 }
  0x6e   : > { %s242_s4 = scalar_lea.sflag (!%p1574_p4), [#allocation6], %s1437_s21  ;;  %s245_s22 = scalar_lea.vmem (!%p1574_p4), [#allocation5], %s1440_s10 }
  0x74   : > { %1161 = dma.done.wait (%p1575_p3), %s242_s4, 256  }
  0x75   : > { %1163 = vsyncadd (%p1575_p3), %s242_s4, 4294967040  ;;  %s250_s11 = sand.u32 1, %s1258_s18   ;;  %s254_s9 = scalar_lea.vmem [#allocation8], %s1440_s10 }
  0x76   : > { %s251_s19 = scalar_lea.sflag [#allocation9], %s250_s11 }
  0x77   : > { %1165 = dma.done.wait (%p1575_p3), %s251_s19, 512  }
  0x78   : > { %1167 = vsyncadd (%p1575_p3), %s251_s19, 4294966784  ;;  %vm305_vm0 = vcmask 261120   ;;  %v1201_v0 = vmov 0.0   ;;  %vm1202_vm1 = vmmov 0   ;;  %v310_v1 = vld [vmem:[%s254_s9] sm:$0xff]  ;;  %vm300_vm2 = vcmask 7168  }
  0x79   : > { %905 = vmatprep.subr.mxu0 %v1201_v0  ;;  %306 = vst.msk [vmem:[#allocation4] sm:$0xff] %vm305_vm0, %v1201_v0  ;;  %307 = vst.msk [vmem:[#allocation4 + $0x8] sm:$0xff] %vm305_vm0, %v1201_v0  ;;  %907 = vmatprep.mubr.msk.f32.mxu0 %vm1202_vm1, %v1201_v0  ;;  %v308_v2 = vld [vmem:[%s245_s22] sm:$0xff]  ;;  %v1203_v4 = vmov -1e+30   ;;  %vm390_vm3 = vcmask 64512  }
  0x7a   : > { %910 = vmatprep.subr.mxu1 %v1201_v0  ;;  %912 = vmatprep.mubr.msk.f32.mxu1 %vm1202_vm1, %v1201_v0  ;;  %v309_v3 = vmul.f32 0.17677669, %v308_v2  ;;  %301 = vst.msk [vmem:[#allocation2] sm:$0xff] %vm300_vm2, %v1203_v4  ;;  %302 = vst.msk [vmem:[#allocation2 + $0x8] sm:$0xff] %vm300_vm2, %v1203_v4  ;;  %v1204_v8 = vmov 0   ;;  %s263_s18 = scalar_lea.vmem [#allocation10], %s1440_s10 }
  0x7b   : > { %906 = vmatpush3.xpose.msk.msra.mxu0 %vm305_vm0, %v310_v1  ;;  %303 = vst.msk [vmem:[#allocation3] sm:$0xff] %vm300_vm2, %v1201_v0  ;;  %304 = vst.msk [vmem:[#allocation3 + $0x8] sm:$0xff] %vm300_vm2, %v1201_v0  ;;  %1004 = vset.pattern.permute.xlu0 %v1204_v8  ;;  %v311_v13 = vld [vmem:[%s263_s18] sm:$0xff]  ;;  %v886_v14 = vld [vmem:[%s263_s18 + $0x8] sm:$0xff]  ;;  %s1205_s24 = smov 32   ;;  %s880_s16 = sshll.u32 %s1437_s21, 3 }
  0x7c   : > { %920 = vmatprep.subr.mxu0 %v1201_v0  ;;  %1005 = vset.pattern.permute.xlu1 %v1204_v8  ;;  %v884_v18 = vld [vmem:[%s245_s22 + $0x8] sm:$0xff]  ;;  %s891_s20 = sshll.u32 %s1186_s15, 7  ;;  %s295_s5 = scalar_lea.vmem [#allocation11], %s880_s16  ;;  %vm715_vm4 = vcmask 523264  }
  0x7d   : > { %911 = vmatpush3.msra.mxu1 %v311_v13  ;;  %v885_v19 = vld [vmem:[%s254_s9 + $0x8] sm:$0xff]  ;;  %v499_v22 = vmul.f32 0.17677669, %v884_v18  ;;  %s732_s7 = sshll.u32 %s295_s5, 4  ;;  %s1494_s8 = scalar_lea.hbm %s1547_s3, %s891_s20  ;;  %s1496_s7 = int_to_ptr.vmem [resolvable:$true] %s732_s7 }
  0x7e   : > { %908 = vmatmul.mubr.msk.f32.vlgmr.msra.gmra.mrb[0].mxu0 %vm305_vm0, %v309_v3  ;;  %915 = vmatprep.subr.mxu1 %v1201_v0  ;;  %s718_s15 = scalar_lea.sflag [#allocation7], %s1437_s21  ;;  %s1108_s26 = scalar_lea.vmem %s1496_s7, 128 }
  0x7f   : > { %922 = vmatprep.mubr.msk.f32.mxu0 %vm1202_vm1, %v1201_v0  ;;  %921 = vmatpush3.msra.mxu0 %v886_v14  ;;  %p1109_p0 = scmp.ne.s32.totalorder %s1496_s7, %s1108_s26  ;;  %p1576_p10 = scmp.ne.s32.totalorder %s1562_s25, 0 }
  0x80   : > { %v606_v53 = vld [vmem:[#allocation4 + $0x8] sm:$0xff]  ;;  %v414_v62 = vld [vmem:[#allocation4] sm:$0xff]  ;;  %s1206_s1 = smov [#allocation11]  }
  0x81   : > { %v389_v9 = vld [vmem:[#allocation2] sm:$0xff]  ;;  %v581_v36 = vld [vmem:[#allocation2 + $0x8] sm:$0xff]  ;;  %p1110_p8 = pnand %p1109_p0, %p1576_p10  ;;  %s1112_s28 = sshll.u32 %s1206_s1, 4  ;;  %s1113_s28 = int_to_ptr.vmem [resolvable:$false] %s1112_s28 }
  0x82   : > { %v406_v25 = vld [vmem:[#allocation3] sm:$0xff]  ;;  %v598_v47 = vld [vmem:[#allocation3 + $0x8] sm:$0xff]  ;;  %s1114_s29 = scalar_lea.vmem %s1113_s28, 256  ;;  %p1115_p12 = scmp.lt.s32.totalorder %s1496_s7, %s1113_s28 }
  0x83   : > { %p1111_p9 = pneg %p1110_p8  ;;  %p1116_p1 = scmp.lt.s32.totalorder %s1114_s29, %s1108_s26 }
  0x85   : > { %p1117_p6 = por %p1116_p1, %p1115_p12 }
  0x87   : > { %p1118_p13 = pnand %p1117_p6, %p1111_p9 }
 0x151   : > { %v385_v5 = vpop.f32.mrb[0].mxu0 }
 0x152   : > { %v909_v6 = vpop.f32.mrb[1].mxu0  ;;  %v391_v7 = vsel %vm390_vm3, %v385_v5, -inf }
 0x153   : > { %392 = vmax.xlane.f32.xlu0 %v391_v7 }
 0x1e0   : > { %v393_v10 = vpop.xlane.xlu0 %392 }
 0x1e1   : > { %v394_v11 = vmax.f32 %v389_v9, %v393_v10 }
 0x1e3   : > { %v395_v12 = vsub.f32 %v389_v9, %v394_v11  ;;  %496 = vst.msk [vmem:[#allocation2] sm:$0xff] %vm300_vm2, %v394_v11  ;;  %400 = vperm.xlu0 %1004, %v394_v11  }
 0x1e5   : > { %v396_v23 = vmul.f32 1.442695, %v395_v12 }
 0x262   : > { %v401_v15 = vpop.permute.xlu0 %400 }
 0x263   : > { %v403_v16 = vsub.f32 %v385_v5, %v401_v15 }
 0x265   : > { %v404_v17 = vmul.f32 1.442695, %v403_v16 }
 0x267   : > { %1006 = vpow2.f32 %v404_v17 }
 0x268   : > { %1008 = vpow2.f32 %v396_v23 }
 0x271   : > { %v1007_v20 = vpop.eup %1006 }
 0x272   : > { %913 = vmatmul.mubr.msk.f32.vlgmr.msra.gmra.mrb[0].mxu1 %vm390_vm3, %v1007_v20  ;;  %v408_v21 = vsel %vm390_vm3, %v1007_v20, 0.0  ;;  %v1009_v24 = vpop.eup %1008 }
 0x273   : > { %916 = vmatpush3.xpose.msk.msra.mxu1 %vm305_vm0, %v885_v19  ;;  %409 = vadd.xlane.f32.xlu0 %v408_v21  ;;  %v407_v26 = vmul.f32 %v1009_v24, %v406_v25 }
 0x274   : > { %917 = vmatprep.mubr.msk.f32.mxu1 %vm1202_vm1, %v1201_v0 }
 0x276   : > { %918 = vmatmul.mubr.msk.f32.vlgmr.msra.gmra.mrb[2].mxu1 %vm305_vm0, %v499_v22 }
 0x300   : > { %v410_v27 = vpop.xlane.xlu0 %409 }
 0x301   : > { %v411_v28 = vadd.f32 %v410_v27, %v407_v26 }
 0x303   : > { %413 = vst.msk [vmem:[#allocation3] sm:$0xff] %vm300_vm2, %v411_v28 }
 0x30a   : > { %v692_v29 = vld [vmem:[#allocation3] sm:$0xff] }
 0x30b   : > { %1010 = vrcp.f32 %v692_v29 }
 0x315   : > { %v1011_v30 = vpop.eup %1010 }
 0x316   : > { %697 = vperm.xlu0 %1004, %v1011_v30  }
 0x345   : > { %v490_v31 = vpop.f32.mrb[0].mxu1 }
 0x346   : > { %v914_v32 = vpop.f32.mrb[1].mxu1 }
 0x349   : > { %v576_v33 = vpop.f32.mrb[2].mxu1 }
 0x34a   : > { %v919_v34 = vpop.f32.mrb[3].mxu1  ;;  %v582_v35 = vsel %vm390_vm3, %v576_v33, -inf }
 0x34b   : > { %583 = vmax.xlane.f32.xlu1 %v582_v35 }
 0x395   : > { %v698_v3 = vpop.permute.xlu0 %697 }
 0x3d8   : > { %v584_v37 = vpop.xlane.xlu1 %583 }
 0x3d9   : > { %v585_v38 = vmax.f32 %v581_v36, %v584_v37 }
 0x3db   : > { %v586_v39 = vsub.f32 %v581_v36, %v585_v38  ;;  %688 = vst.msk [vmem:[#allocation2 + $0x8] sm:$0xff] %vm300_vm2, %v585_v38  ;;  %591 = vperm.xlu1 %1005, %v585_v38  }
 0x3dd   : > { %v587_v45 = vmul.f32 1.442695, %v586_v39 }
 0x45a   : > { %v592_v40 = vpop.permute.xlu1 %591 }
 0x45b   : > { %v594_v41 = vsub.f32 %v576_v33, %v592_v40 }
 0x45d   : > { %v595_v42 = vmul.f32 1.442695, %v594_v41 }
 0x45f   : > { %1012 = vpow2.f32 %v595_v42 }
 0x460   : > { %1014 = vpow2.f32 %v587_v45 }
 0x469   : > { %v1013_v43 = vpop.eup %1012 }
 0x46a   : > { %923 = vmatmul.mubr.msk.f32.vlgmr.msra.gmra.mrb[2].mxu0 %vm390_vm3, %v1013_v43  ;;  %v600_v44 = vsel %vm390_vm3, %v1013_v43, 0.0  ;;  %v1015_v46 = vpop.eup %1014 }
 0x46b   : > { %601 = vadd.xlane.f32.xlu1 %v600_v44  ;;  %v599_v48 = vmul.f32 %v1015_v46, %v598_v47 }
 0x47c   : > { %609 = vperm.xlu1 %1005, %v1015_v46  }
 0x4f8   : > { %v602_v49 = vpop.xlane.xlu1 %601 }
 0x4f9   : > { %v603_v50 = vadd.f32 %v602_v49, %v599_v48 }
 0x4fb   : > { %604 = vst.msk [vmem:[#allocation3 + $0x8] sm:$0xff] %vm300_vm2, %v603_v50 }
 0x4fc   : > { %v610_v54 = vpop.permute.xlu1 %609 }
 0x4fd   : > { %v612_v55 = vmul.f32 %v610_v54, %v606_v53 }
 0x502   : > { %v701_v51 = vld [vmem:[#allocation3 + $0x8] sm:$0xff] }
 0x503   : > { %1016 = vrcp.f32 %v701_v51 }
 0x50d   : > { %v1017_v52 = vpop.eup %1016 }
 0x50e   : > { %706 = vperm.xlu1 %1005, %v1017_v52  }
 0x512   : > { %417 = vperm.xlu1 %1005, %v1009_v24  }
 0x53d   : > { %v682_v56 = vpop.f32.mrb[2].mxu0 }
 0x53e   : > { %v686_v57 = vadd.f32 %v682_v56, %v612_v55  ;;  %v924_v58 = vpop.f32.mrb[3].mxu0 }
 0x540   : > { %687 = vst.msk [vmem:[#allocation4 + $0x8] sm:$0xff] %vm305_vm0, %v686_v57 }
 0x547   : > { %v703_v59 = vld [vmem:[#allocation4 + $0x8] sm:$0xff] }
 0x58d   : > { %v707_v60 = vpop.permute.xlu1 %706 }
 0x58e   : > { %v709_v61 = vmul.f32 %v707_v60, %v703_v59 }
 0x590   : > { %711 = vrot.lane.b32.xlu1 %v709_v61, %s1205_s24 }
 0x591   : > { %v418_v63 = vpop.permute.xlu1 %417 }
 0x592   : > { %v420_v0 = vmul.f32 %v418_v63, %v414_v62 }
 0x594   : > { %v494_v1 = vadd.f32 %v490_v31, %v420_v0 }
 0x596   : > { %495 = vst.msk [vmem:[#allocation4] sm:$0xff] %vm305_vm0, %v494_v1 }
 0x59d   : > { %v694_v2 = vld [vmem:[#allocation4] sm:$0xff] }
 0x59e   : > { %v700_v4 = vmul.f32 %v698_v3, %v694_v2 }
 0x602   : > { %v712_v5 = vpop.permute.xlu1 %711 }
 0x603   : > { %v714_v6 = vsel %vm305_vm0, %v700_v4, %v712_v5 }
 0x604   : > { %716 = vst.msk [vmem:[%s295_s5] sm:$0xff] %vm715_vm4, %v714_v6 }
 0x605   : > { %1121 = shalt.err (!%p1118_p13)
}
 0x606   : > { %s1122_s23 = scalar_lea.hbm %s1494_s8, 128  ;;  %s1126_s4 = scalar_lea.hbm %s1547_s3, 256 }
 0x607   : > { %p1123_p11 = scmp.ne.s32.totalorder %s1494_s8, %s1122_s23  ;;  %p1127_p7 = scmp.lt.u32.totalorder %s1494_s8, %s1547_s3 }
 0x608   : > { %p1128_p4 = scmp.lt.u32.totalorder %s1126_s4, %s1122_s23  ;;  %p1130_p0 = scmp.lt.u32.totalorder %s1122_s23, %s1494_s8 }
 0x609   : > { %p1124_p2 = pnand %p1123_p11, %p1576_p10 }
 0x60a   : > { %p1129_p3 = por %p1128_p4, %p1127_p7 }
 0x60b   : > { %p1125_p5 = pneg %p1124_p2 }
 0x60c   : > { %p1131_p8 = por %p1130_p0, %p1129_p3 }
 0x60e   : > { %p1132_p9 = pnand %p1131_p8, %p1125_p5 }
 0x610   : > { %1135 = shalt.err (!%p1132_p9)
}
 0x611   : > { %931 = dma.vmem_to_hbm [thread:$0]  (%p1576_p10), %s1496_s7, 128, %s1494_s8, %s718_s15  }
 0x612 PF: > { %s744_s19 = sand.u32 1, %s1174_s12   ;;  %p1577_p12 = scmp.ne.s32.totalorder %s1564_s27, 0 }
 0x613   : > { %p1578_p1 = scmp.ge.s32.totalorder %s1194_s17, 2  ;;  %s745_s9 = scalar_lea.sflag [#allocation7], %s744_s19 }
 0x615   : > { %p944_p6 = pnand %p1578_p1, %p1577_p12 }
 0x617   : > { %1169 = dma.done.wait (!%p944_p6), %s745_s9, 128  }
 0x618   : > { %1171 = vsyncadd (!%p944_p6), %s745_s9, 4294967168  ;;  %s22_s17 = sadd.s32 1, %s1194_s17   ;;  %s1579_s25 = sld [smem:[#allocation17_spill]] }
 0x619   : > { %p19_p13 = scmp.ge.s32.totalorder %s22_s17, 4   ;;  %s1580_s15 = sld [smem:[#allocation15_spill]] }
 0x61a   : > { %s1581_s16 = sld [smem:[#allocation16_spill]]  ;;  %s1582_s12 = smov %s1178_s13 }
 0x61b   : > { %s1583_s13 = smov %s1182_s14  ;;  %21 = sbr.rel (!%p19_p13) target bundleno = 10 (0xa), region = 115 }
 0x61e   : > { %s1584_s14 = smov %s1579_s25 }
 0x622   :  { %750 = vsyncpa [#allocation6], 1 }
 0x623   :  { %752 = vsyncpa [#allocation6 + $0x1], 1 }
 0x624   :  { %753 = vsyncpa [#allocation9], 1 }
 0x625   :  { %755 = vsyncpa [#allocation9 + $0x1], 1 }
 0x626   :  { %756 = vsyncpa [#allocation7], 1 }
 0x627   :  { %758 = vsyncpa [#allocation7 + $0x1], 1 }

</bundles_post_ra>
